<compile_context>
chip_gen: v6e
topology: v6e:2x2x1
jax: 0.10.0
libtpu: 0.0.40
codegen_flags: <defaults>
</compile_context>

<pallas_src>
import functools

import jax
import jax.numpy as jnp
from jax.experimental import pallas as pl
from jax.experimental.pallas import tpu as pltpu

_LN_EPS = 1e-5  # PyTorch nn.LayerNorm default.


def _slot_attention_kernel(
    slots_ref,      # (BB*S, Din)  flattened slots block (batch-major rows)
    obs_ref,        # (C, BB*N)    feature-major obs block (lane-dense)
    wq_ref,         # (Din, QK)    input-LN affine + qk**-0.5 folded in
    bq_ref,         # (1, QK)
    wkv_ref,        # (QK+V, C)    fused k|v projection, obs-LN affine folded in
    bkv_ref,        # (QK+V, 1)
    gb_out_ref,     # (2, V)       out-LN gamma / beta packed
    slots_out_ref,  # (BB, S, V)
    attn_out_ref,   # (BB, S, N)
    *,
    bb, s, n, qk,
):
    # ---- slots: mean/var normalization only (affine folded into wq/bq) ----
    slots = slots_ref[...]
    smean = jnp.mean(slots, axis=-1, keepdims=True)
    svar = jnp.mean(jnp.square(slots - smean), axis=-1, keepdims=True)
    slots_hat = (slots - smean) * jax.lax.rsqrt(svar + _LN_EPS)

    # q already carries qk_size**-0.5 and the input-LN affine.
    q = jnp.dot(slots_hat, wq_ref[...],
                preferred_element_type=jnp.float32) + bq_ref[...]      # (BB*S, QK)

    # ---- obs: feature-major LayerNorm over C (sublane axis, lane-dense) ----
    obs = obs_ref[...]                                                  # (C, BB*N)
    omean = jnp.mean(obs, axis=0, keepdims=True)
    ovar = jnp.mean(jnp.square(obs - omean), axis=0, keepdims=True)
    obs_hat = (obs - omean) * jax.lax.rsqrt(ovar + _LN_EPS)

    # Single fused projection for k and v: (QK+V, C) @ (C, BB*N).
    kv = jnp.dot(wkv_ref[...], obs_hat,
                 preferred_element_type=jnp.float32) + bkv_ref[...]     # (QK+V, BB*N)
    k = kv[:qk, :]                                                      # (QK, BB*N)
    v = kv[qk:, :]                                                      # (V,  BB*N)

    gb = gb_out_ref[...]
    g_out = gb[0:1, :]
    b_out = gb[1:2, :]

    # Per-batch attention (BB is a small static block; loop unrolls).
    for b in range(bb):
        qb = q[b * s:(b + 1) * s, :]             # (S, QK)
        kb = k[:, b * n:(b + 1) * n]             # (QK, N)
        vb = v[:, b * n:(b + 1) * n]             # (V, N)

        logits = jnp.dot(qb, kb, preferred_element_type=jnp.float32)    # (S, N)

        # Softmax over the SLOT axis (torch dim=1 of (B, S, N)).
        m = jnp.max(logits, axis=0, keepdims=True)
        e = jnp.exp(logits - m)
        attn = e * pl.reciprocal(jnp.sum(e, axis=0, keepdims=True), approx=True)
        attn_out_ref[b] = attn

        # Re-normalize over the spatial axis, then weighted sum of values.
        w = attn * pl.reciprocal(jnp.sum(attn, axis=-1, keepdims=True), approx=True)
        temp = jax.lax.dot_general(
            w, vb, (((1,), (1,)), ((), ())),
            preferred_element_type=jnp.float32)                         # (S, V)

        # Output LayerNorm (its affine cannot be folded).
        tmean = jnp.mean(temp, axis=-1, keepdims=True)
        tvar = jnp.mean(jnp.square(temp - tmean), axis=-1, keepdims=True)
        slots_out_ref[b] = (temp - tmean) * jax.lax.rsqrt(tvar + _LN_EPS) * g_out + b_out


def slot_attention(slots, obs, params, *, batch_block=None):
    """slots: (B, S, Din) f32, obs: (B, H, W, C) f32 (NHWC, as in torch forward)."""
    B, S, Din = slots.shape
    _, H, W, C = obs.shape
    N = H * W
    QK = params["wq"].shape[0]
    V = params["wv"].shape[0]

    if batch_block is None:
        # Keep >= 2 grid steps (dual TensorCore on v7x) while batching the rest
        # of the batch dim into each step to cut per-step pipeline overhead.
        batch_block = B // 2 if (B >= 2 and B % 2 == 0) else 1
    BB = batch_block
    assert B % BB == 0, "batch_block must divide the batch size"
    grid = (B // BB,)

    # ---- host-side constant folding (one-time layout/weight prep) ----
    f32 = jnp.float32
    g_in = params["g_in"].astype(f32)
    b_in = params["b_in"].astype(f32)
    g_obs = params["g_obs"].astype(f32)
    b_obs = params["b_obs"].astype(f32)

    wq = params["wq"].astype(f32)                       # (QK, Din) torch layout
    bq = params["bq"].astype(f32)
    scale = QK ** -0.5
    wq_f = (wq.T * g_in[:, None]) * scale               # (Din, QK)
    bq_f = ((b_in @ wq.T + bq) * scale).reshape(1, QK)  # (1, QK)

    wkv = jnp.concatenate([params["wk"], params["wv"]], axis=0).astype(f32)  # (QK+V, C)
    bkv = jnp.concatenate([params["bk"], params["bv"]], axis=0).astype(f32)  # (QK+V,)
    wkv_f = wkv * g_obs[None, :]                        # (QK+V, C)
    bkv_f = (wkv @ b_obs + bkv).reshape(QK + V, 1)      # (QK+V, 1)

    gb_out = jnp.stack([params["g_out"].astype(f32),
                        params["b_out"].astype(f32)])   # (2, V)

    # ---- lane-dense data layouts ----
    slots_flat = slots.reshape(B * S, Din)              # batch-major rows
    obs_fm = obs.reshape(B * N, C).T                    # (C, B*N) feature-major

    kernel = functools.partial(_slot_attention_kernel, bb=BB, s=S, n=N, qk=QK)

    in_specs = [
        pl.BlockSpec((BB * S, Din), lambda i: (i, 0)),   # slots block
        pl.BlockSpec((C, BB * N), lambda i: (0, i)),     # obs block (feature-major)
        pl.BlockSpec((Din, QK), lambda i: (0, 0)),       # wq_f
        pl.BlockSpec((1, QK), lambda i: (0, 0)),         # bq_f
        pl.BlockSpec((QK + V, C), lambda i: (0, 0)),     # wkv_f
        pl.BlockSpec((QK + V, 1), lambda i: (0, 0)),     # bkv_f
        pl.BlockSpec((2, V), lambda i: (0, 0)),          # out-LN gamma/beta
    ]
    out_specs = (
        pl.BlockSpec((BB, S, V), lambda i: (i, 0, 0)),
        pl.BlockSpec((BB, S, N), lambda i: (i, 0, 0)),
    )
    out_shape = (
        jax.ShapeDtypeStruct((B, S, V), jnp.float32),
        jax.ShapeDtypeStruct((B, S, N), jnp.float32),
    )

    slots_out, attn = pl.pallas_call(
        kernel,
        grid=grid,
        in_specs=in_specs,
        out_specs=out_specs,
        out_shape=out_shape,
        compiler_params=pltpu.CompilerParams(dimension_semantics=("parallel",)),
    )(slots_flat, obs_fm, wq_f, bq_f, wkv_f, bkv_f, gb_out)

    # Exact replica of the torch tail: attentions.view(B,h,w,-1).permute(0,3,1,2)
    spatial_logits = jnp.transpose(attn.reshape(B, H, W, -1), (0, 3, 1, 2))
    return slots_out, spatial_logits


def slot_attention_reference(slots, obs, params, eps=_LN_EPS):
    """Pure-JAX mirror of the PyTorch forward (unfused, exact op ordering)."""
    def ln(x, g, b):
        m = jnp.mean(x, axis=-1, keepdims=True)
        v = jnp.mean(jnp.square(x - m), axis=-1, keepdims=True)
        return (x - m) * jax.lax.rsqrt(v + eps) * g + b

    B, H, W, C = obs.shape
    qk_size = params["wq"].shape[0]
    s_n = ln(slots, params["g_in"], params["b_in"])
    o_n = ln(obs, params["g_obs"], params["b_obs"])
    k = o_n @ params["wk"].T + params["bk"]              # (B, H, W, QK)
    v = o_n @ params["wv"].T + params["bv"]              # (B, H, W, V)
    q = (s_n @ params["wq"].T + params["bq"]) * qk_size ** -0.5
    k_flat = jnp.transpose(k, (0, 3, 1, 2)).reshape(B, qk_size, H * W)
    qk = jnp.einsum("bsd,bdn->bsn", q, k_flat)
    attn = jax.nn.softmax(qk, axis=1)
    w = attn / jnp.sum(attn, axis=-1, keepdims=True)
    temp = jnp.einsum("bsn,bnv->bsv", w, v.reshape(B, H * W, -1))
    slots_out = ln(temp, params["g_out"], params["b_out"])
    spatial_logits = jnp.transpose(attn.reshape(B, H, W, -1), (0, 3, 1, 2))
    return slots_out, spatial_logits


def init_params(key, input_size, obs_channels, qk_size, v_size):
    ks = jax.random.split(key, 6)
    scale = 0.1

    def lin(kw, kb, out_dim, in_dim):
        w = scale * jax.random.normal(kw, (out_dim, in_dim), jnp.float32)
        b = scale * jax.random.normal(kb, (out_dim,), jnp.float32)
        return w, b

    wq, bq = lin(ks[0], ks[1], qk_size, input_size)
    wk, bk = lin(ks[2], ks[3], qk_size, obs_channels)
    wv, bv = lin(ks[4], ks[5], v_size, obs_channels)
    return {
        "wq": wq, "bq": bq,
        "wk": wk, "bk": bk,
        "wv": wv, "bv": bv,
        # nn.LayerNorm default init: weight=1, bias=0.
        "g_in": jnp.ones((input_size,), jnp.float32),
        "b_in": jnp.zeros((input_size,), jnp.float32),
        "g_obs": jnp.ones((obs_channels,), jnp.float32),
        "b_obs": jnp.zeros((obs_channels,), jnp.float32),
        "g_out": jnp.ones((v_size,), jnp.float32),
        "b_out": jnp.zeros((v_size,), jnp.float32),
    }


if __name__ == "__main__":
    H, W = 16, 16
    obs_channels = 4
    input_size = 32
    num_slots = 8
    qk_size = 32
    v_size = 32

    key = jax.random.PRNGKey(0)
    k_params, k_data = jax.random.split(key)
    params = init_params(k_params, input_size, obs_channels, qk_size, v_size)

    # B=2 exercises BB=1 (grid of 2 steps); B=4 exercises batch blocking BB=2.
    for B in (2, 4):
        k_slots, k_obs = jax.random.split(jax.random.fold_in(k_data, B))
        slots = jax.random.normal(k_slots, (B, num_slots, input_size), jnp.float32)
        obs = jax.random.normal(k_obs, (B, H, W, obs_channels), jnp.float32)

        slots_out, spatial_logits = slot_attention(slots, obs, params)
        jax.block_until_ready((slots_out, spatial_logits))

        assert slots_out.shape == (B, num_slots, v_size)
        assert spatial_logits.shape == (B, num_slots, H, W)

        ref_slots, ref_spatial = slot_attention_reference(slots, obs, params)
        # Tolerance covers the approx-reciprocal softmax and the folded-weight
        # summation-order change; real bugs produce O(0.1..1) deviations.
        assert float(jnp.max(jnp.abs(slots_out - ref_slots))) < 5e-2
        assert float(jnp.max(jnp.abs(spatial_logits - ref_spatial))) < 2e-2

    print("KERNEL_OK")
</pallas_src>

<mosaic_0001>
module attributes {stable_mosaic.version = 11 : i64} {
  func.func @_slot_attention_kernel(%arg0: i32, %arg1: memref<8x32xf32, #tpu.memory_space<vmem>>, %arg2: memref<4x256xf32, #tpu.memory_space<vmem>>, %arg3: memref<32x32xf32, #tpu.memory_space<vmem>>, %arg4: memref<1x32xf32, #tpu.memory_space<vmem>>, %arg5: memref<64x4xf32, #tpu.memory_space<vmem>>, %arg6: memref<64x1xf32, #tpu.memory_space<vmem>>, %arg7: memref<2x32xf32, #tpu.memory_space<vmem>>, %arg8: memref<1x8x32xf32, #tpu.memory_space<vmem>>, %arg9: memref<1x8x256xf32, #tpu.memory_space<vmem>>) attributes {dimension_semantics = [#tpu.dimension_semantics<parallel>], iteration_bounds = array<i64: 2>, scalar_prefetch = 0 : i64, scratch_operands = 0 : i64, tpu.core_type = #tpu.core_type<tc>, window_params = [{transform_indices = @transform_0, window_bounds = array<i64: 8, 32>}, {transform_indices = @transform_1, window_bounds = array<i64: 4, 256>}, {pipeline_mode = #tpu.pipeline_mode<synchronous>, transform_indices = @transform_2, window_bounds = array<i64: 32, 32>}, {pipeline_mode = #tpu.pipeline_mode<synchronous>, transform_indices = @transform_3, window_bounds = array<i64: 1, 32>}, {pipeline_mode = #tpu.pipeline_mode<synchronous>, transform_indices = @transform_4, window_bounds = array<i64: 64, 4>}, {pipeline_mode = #tpu.pipeline_mode<synchronous>, transform_indices = @transform_5, window_bounds = array<i64: 64, 1>}, {pipeline_mode = #tpu.pipeline_mode<synchronous>, transform_indices = @transform_6, window_bounds = array<i64: 2, 32>}, {transform_indices = @transform_7, window_bounds = array<i64: 1, 8, 32>}, {transform_indices = @transform_8, window_bounds = array<i64: 1, 8, 256>}]} {
    %c0 = arith.constant 0 : index
    %c0_0 = arith.constant 0 : index
    %0 = vector.load %arg1[%c0, %c0_0] : memref<8x32xf32, #tpu.memory_space<vmem>>, vector<8x32xf32>
    %cst = arith.constant dense<0.000000e+00> : vector<8xf32>
    %1 = vector.multi_reduction <add>, %0, %cst [1] : vector<8x32xf32> to vector<8xf32>
    %2 = vector.shape_cast %1 : vector<8xf32> to vector<8x1xf32>
    %cst_1 = arith.constant 3.200000e+01 : f32
    %3 = vector.broadcast %cst_1 : f32 to vector<8x1xf32>
    %4 = arith.divf %2, %3 : vector<8x1xf32>
    %5 = vector.broadcast %4 : vector<8x1xf32> to vector<8x32xf32>
    %6 = arith.subf %0, %5 : vector<8x32xf32>
    %7 = arith.mulf %6, %6 : vector<8x32xf32>
    %cst_2 = arith.constant dense<0.000000e+00> : vector<8xf32>
    %8 = vector.multi_reduction <add>, %7, %cst_2 [1] : vector<8x32xf32> to vector<8xf32>
    %9 = vector.shape_cast %8 : vector<8xf32> to vector<8x1xf32>
    %cst_3 = arith.constant 3.200000e+01 : f32
    %10 = vector.broadcast %cst_3 : f32 to vector<8x1xf32>
    %11 = arith.divf %9, %10 : vector<8x1xf32>
    %12 = vector.broadcast %4 : vector<8x1xf32> to vector<8x32xf32>
    %13 = arith.subf %0, %12 : vector<8x32xf32>
    %cst_4 = arith.constant 9.99999974E-6 : f32
    %14 = vector.broadcast %cst_4 : f32 to vector<8x1xf32>
    %15 = arith.addf %11, %14 : vector<8x1xf32>
    %16 = math.rsqrt %15 : vector<8x1xf32>
    %17 = vector.broadcast %16 : vector<8x1xf32> to vector<8x32xf32>
    %18 = arith.mulf %13, %17 : vector<8x32xf32>
    %c0_5 = arith.constant 0 : index
    %c0_6 = arith.constant 0 : index
    %19 = vector.load %arg3[%c0_5, %c0_6] : memref<32x32xf32, #tpu.memory_space<vmem>>, vector<32x32xf32>
    %cst_7 = arith.constant dense<0.000000e+00> : vector<8x32xf32>
    %20 = tpu.matmul %18, %19, %cst_7 {dimension_numbers = #tpu.dot_dimension_numbers<[1], [0], [0], [1], [0, 0, 1, 1], [], []>} : vector<8x32xf32>, vector<32x32xf32>, vector<8x32xf32> -> vector<8x32xf32>
    %c0_8 = arith.constant 0 : index
    %c0_9 = arith.constant 0 : index
    %21 = vector.load %arg4[%c0_8, %c0_9] : memref<1x32xf32, #tpu.memory_space<vmem>>, vector<1x32xf32>
    %22 = vector.broadcast %21 : vector<1x32xf32> to vector<8x32xf32>
    %23 = arith.addf %20, %22 : vector<8x32xf32>
    %c0_10 = arith.constant 0 : index
    %c0_11 = arith.constant 0 : index
    %24 = vector.load %arg2[%c0_10, %c0_11] : memref<4x256xf32, #tpu.memory_space<vmem>>, vector<4x256xf32>
    %cst_12 = arith.constant dense<0.000000e+00> : vector<256xf32>
    %25 = vector.multi_reduction <add>, %24, %cst_12 [0] : vector<4x256xf32> to vector<256xf32>
    %26 = vector.shape_cast %25 : vector<256xf32> to vector<1x256xf32>
    %cst_13 = arith.constant 4.000000e+00 : f32
    %27 = vector.broadcast %cst_13 : f32 to vector<1x256xf32>
    %28 = arith.divf %26, %27 : vector<1x256xf32>
    %29 = vector.broadcast %28 : vector<1x256xf32> to vector<4x256xf32>
    %30 = arith.subf %24, %29 : vector<4x256xf32>
    %31 = arith.mulf %30, %30 : vector<4x256xf32>
    %cst_14 = arith.constant dense<0.000000e+00> : vector<256xf32>
    %32 = vector.multi_reduction <add>, %31, %cst_14 [0] : vector<4x256xf32> to vector<256xf32>
    %33 = vector.shape_cast %32 : vector<256xf32> to vector<1x256xf32>
    %cst_15 = arith.constant 4.000000e+00 : f32
    %34 = vector.broadcast %cst_15 : f32 to vector<1x256xf32>
    %35 = arith.divf %33, %34 : vector<1x256xf32>
    %36 = vector.broadcast %28 : vector<1x256xf32> to vector<4x256xf32>
    %37 = arith.subf %24, %36 : vector<4x256xf32>
    %cst_16 = arith.constant 9.99999974E-6 : f32
    %38 = vector.broadcast %cst_16 : f32 to vector<1x256xf32>
    %39 = arith.addf %35, %38 : vector<1x256xf32>
    %40 = math.rsqrt %39 : vector<1x256xf32>
    %41 = vector.broadcast %40 : vector<1x256xf32> to vector<4x256xf32>
    %42 = arith.mulf %37, %41 : vector<4x256xf32>
    %c0_17 = arith.constant 0 : index
    %c0_18 = arith.constant 0 : index
    %43 = vector.load %arg5[%c0_17, %c0_18] : memref<64x4xf32, #tpu.memory_space<vmem>>, vector<64x4xf32>
    %cst_19 = arith.constant dense<0.000000e+00> : vector<64x256xf32>
    %44 = tpu.matmul %43, %42, %cst_19 {dimension_numbers = #tpu.dot_dimension_numbers<[1], [0], [0], [1], [0, 0, 1, 1], [], []>} : vector<64x4xf32>, vector<4x256xf32>, vector<64x256xf32> -> vector<64x256xf32>
    %c0_20 = arith.constant 0 : index
    %c0_21 = arith.constant 0 : index
    %45 = vector.load %arg6[%c0_20, %c0_21] : memref<64x1xf32, #tpu.memory_space<vmem>>, vector<64x1xf32>
    %46 = vector.broadcast %45 : vector<64x1xf32> to vector<64x256xf32>
    %47 = arith.addf %44, %46 : vector<64x256xf32>
    %48 = vector.extract_strided_slice %47 {offsets = [0, 0], sizes = [32, 256], strides = [1, 1]} : vector<64x256xf32> to vector<32x256xf32>
    %49 = vector.extract_strided_slice %47 {offsets = [32, 0], sizes = [32, 256], strides = [1, 1]} : vector<64x256xf32> to vector<32x256xf32>
    %c0_22 = arith.constant 0 : index
    %c0_23 = arith.constant 0 : index
    %50 = vector.load %arg7[%c0_22, %c0_23] : memref<2x32xf32, #tpu.memory_space<vmem>>, vector<2x32xf32>
    %51 = vector.extract_strided_slice %50 {offsets = [0, 0], sizes = [1, 32], strides = [1, 1]} : vector<2x32xf32> to vector<1x32xf32>
    %52 = vector.extract_strided_slice %50 {offsets = [1, 0], sizes = [1, 32], strides = [1, 1]} : vector<2x32xf32> to vector<1x32xf32>
    %cst_24 = arith.constant dense<0.000000e+00> : vector<8x256xf32>
    %53 = tpu.matmul %23, %48, %cst_24 {dimension_numbers = #tpu.dot_dimension_numbers<[1], [0], [0], [1], [0, 0, 1, 1], [], []>} : vector<8x32xf32>, vector<32x256xf32>, vector<8x256xf32> -> vector<8x256xf32>
    %cst_25 = arith.constant dense<0xFF800000> : vector<256xf32>
    %54 = vector.multi_reduction <maximumf>, %53, %cst_25 [0] : vector<8x256xf32> to vector<256xf32>
    %55 = vector.shape_cast %54 : vector<256xf32> to vector<1x256xf32>
    %56 = vector.broadcast %55 : vector<1x256xf32> to vector<8x256xf32>
    %57 = arith.subf %53, %56 : vector<8x256xf32>
    %58 = math.exp %57 : vector<8x256xf32>
    %cst_26 = arith.constant dense<0.000000e+00> : vector<256xf32>
    %59 = vector.multi_reduction <add>, %58, %cst_26 [0] : vector<8x256xf32> to vector<256xf32>
    %60 = vector.shape_cast %59 : vector<256xf32> to vector<1x256xf32>
    %61 = tpu.reciprocal %60 {approx = true} : vector<1x256xf32> -> vector<1x256xf32>
    %62 = vector.broadcast %61 : vector<1x256xf32> to vector<8x256xf32>
    %63 = arith.mulf %58, %62 : vector<8x256xf32>
    %c0_27 = arith.constant 0 : index
    %c0_28 = arith.constant 0 : index
    %c0_29 = arith.constant 0 : index
    %64 = vector.load %arg9[%c0_27, %c0_28, %c0_29] : memref<1x8x256xf32, #tpu.memory_space<vmem>>, vector<1x8x256xf32>
    %65 = vector.shape_cast %64 : vector<1x8x256xf32> to vector<8x256xf32>
    %66 = vector.shape_cast %63 : vector<8x256xf32> to vector<1x8x256xf32>
    tpu.vector_store %arg9[%c0_27, %c0_28, %c0_29], %66 {strides = array<i32>} : memref<1x8x256xf32, #tpu.memory_space<vmem>>, vector<1x8x256xf32>,
    %cst_30 = arith.constant dense<0.000000e+00> : vector<8xf32>
    %67 = vector.multi_reduction <add>, %63, %cst_30 [1] : vector<8x256xf32> to vector<8xf32>
    %68 = vector.shape_cast %67 : vector<8xf32> to vector<8x1xf32>
    %69 = tpu.reciprocal %68 {approx = true} : vector<8x1xf32> -> vector<8x1xf32>
    %70 = vector.broadcast %69 : vector<8x1xf32> to vector<8x256xf32>
    %71 = arith.mulf %63, %70 : vector<8x256xf32>
    %cst_31 = arith.constant dense<0.000000e+00> : vector<8x32xf32>
    %72 = tpu.matmul %71, %49, %cst_31 {dimension_numbers = #tpu.dot_dimension_numbers<[1], [1], [0], [0], [0, 0, 1, 0], [], []>} : vector<8x256xf32>, vector<32x256xf32>, vector<8x32xf32> -> vector<8x32xf32>
    %cst_32 = arith.constant dense<0.000000e+00> : vector<8xf32>
    %73 = vector.multi_reduction <add>, %72, %cst_32 [1] : vector<8x32xf32> to vector<8xf32>
    %74 = vector.shape_cast %73 : vector<8xf32> to vector<8x1xf32>
    %cst_33 = arith.constant 3.200000e+01 : f32
    %75 = vector.broadcast %cst_33 : f32 to vector<8x1xf32>
    %76 = arith.divf %74, %75 : vector<8x1xf32>
    %77 = vector.broadcast %76 : vector<8x1xf32> to vector<8x32xf32>
    %78 = arith.subf %72, %77 : vector<8x32xf32>
    %79 = arith.mulf %78, %78 : vector<8x32xf32>
    %cst_34 = arith.constant dense<0.000000e+00> : vector<8xf32>
    %80 = vector.multi_reduction <add>, %79, %cst_34 [1] : vector<8x32xf32> to vector<8xf32>
    %81 = vector.shape_cast %80 : vector<8xf32> to vector<8x1xf32>
    %cst_35 = arith.constant 3.200000e+01 : f32
    %82 = vector.broadcast %cst_35 : f32 to vector<8x1xf32>
    %83 = arith.divf %81, %82 : vector<8x1xf32>
    %84 = vector.broadcast %76 : vector<8x1xf32> to vector<8x32xf32>
    %85 = arith.subf %72, %84 : vector<8x32xf32>
    %cst_36 = arith.constant 9.99999974E-6 : f32
    %86 = vector.broadcast %cst_36 : f32 to vector<8x1xf32>
    %87 = arith.addf %83, %86 : vector<8x1xf32>
    %88 = math.rsqrt %87 : vector<8x1xf32>
    %89 = vector.broadcast %88 : vector<8x1xf32> to vector<8x32xf32>
    %90 = arith.mulf %85, %89 : vector<8x32xf32>
    %91 = vector.broadcast %51 : vector<1x32xf32> to vector<8x32xf32>
    %92 = arith.mulf %90, %91 : vector<8x32xf32>
    %93 = vector.broadcast %52 : vector<1x32xf32> to vector<8x32xf32>
    %94 = arith.addf %92, %93 : vector<8x32xf32>
    %c0_37 = arith.constant 0 : index
    %c0_38 = arith.constant 0 : index
    %c0_39 = arith.constant 0 : index
    %95 = vector.load %arg8[%c0_37, %c0_38, %c0_39] : memref<1x8x32xf32, #tpu.memory_space<vmem>>, vector<1x8x32xf32>
    %96 = vector.shape_cast %95 : vector<1x8x32xf32> to vector<8x32xf32>
    %97 = vector.shape_cast %94 : vector<8x32xf32> to vector<1x8x32xf32>
    tpu.vector_store %arg8[%c0_37, %c0_38, %c0_39], %97 {strides = array<i32>} : memref<1x8x32xf32, #tpu.memory_space<vmem>>, vector<1x8x32xf32>,
    return
  }
  func.func @transform_0(%arg0: i32) -> (i32, i32) {
    %c0_i32 = arith.constant 0 : i32
    %c0_i32_0 = arith.constant 0 : i32
    return %arg0, %c0_i32 : i32, i32
  }
  func.func @transform_1(%arg0: i32) -> (i32, i32) {
    %c0_i32 = arith.constant 0 : i32
    %c0_i32_0 = arith.constant 0 : i32
    return %c0_i32, %arg0 : i32, i32
  }
  func.func @transform_2(%arg0: i32) -> (i32, i32) {
    %c0_i32 = arith.constant 0 : i32
    %c0_i32_0 = arith.constant 0 : i32
    %c0_i32_1 = arith.constant 0 : i32
    return %c0_i32, %c0_i32_0 : i32, i32
  }
  func.func @transform_3(%arg0: i32) -> (i32, i32) {
    %c0_i32 = arith.constant 0 : i32
    %c0_i32_0 = arith.constant 0 : i32
    %c0_i32_1 = arith.constant 0 : i32
    return %c0_i32, %c0_i32_0 : i32, i32
  }
  func.func @transform_4(%arg0: i32) -> (i32, i32) {
    %c0_i32 = arith.constant 0 : i32
    %c0_i32_0 = arith.constant 0 : i32
    %c0_i32_1 = arith.constant 0 : i32
    return %c0_i32, %c0_i32_0 : i32, i32
  }
  func.func @transform_5(%arg0: i32) -> (i32, i32) {
    %c0_i32 = arith.constant 0 : i32
    %c0_i32_0 = arith.constant 0 : i32
    %c0_i32_1 = arith.constant 0 : i32
    return %c0_i32, %c0_i32_0 : i32, i32
  }
  func.func @transform_6(%arg0: i32) -> (i32, i32) {
    %c0_i32 = arith.constant 0 : i32
    %c0_i32_0 = arith.constant 0 : i32
    %c0_i32_1 = arith.constant 0 : i32
    return %c0_i32, %c0_i32_0 : i32, i32
  }
  func.func @transform_7(%arg0: i32) -> (i32, i32, i32) {
    %c0_i32 = arith.constant 0 : i32
    %c0_i32_0 = arith.constant 0 : i32
    %c0_i32_1 = arith.constant 0 : i32
    return %arg0, %c0_i32, %c0_i32_0 : i32, i32, i32
  }
  func.func @transform_8(%arg0: i32) -> (i32, i32, i32) {
    %c0_i32 = arith.constant 0 : i32
    %c0_i32_0 = arith.constant 0 : i32
    %c0_i32_1 = arith.constant 0 : i32
    return %arg0, %c0_i32, %c0_i32_0 : i32, i32, i32
  }
}

</mosaic_0001>

<bundles_post_ra>
// kernel: tpu_custom_call.1
= control target key start
LH: loop header
LB: loop body
LE: loop exit
PB: predicated region body
PF: predicated region fallthrough
CT: control target
= control target key end

     0   :  { %s1516_s0 = inlined_call_operand.vmem [shape: f32[16,32], index: 0, kind: input, shape index: {}]   ;;  %s1517_s1 = inlined_call_operand.vmem [shape: f32[4,512], index: 1, kind: input, shape index: {}]   ;;  %s1518_s2 = inlined_call_operand.vmem [shape: f32[32,32], index: 2, kind: input, shape index: {}]   ;;  %s1519_s3 = inlined_call_operand.vmem [shape: f32[1,32], index: 3, kind: input, shape index: {}]   ;;  %s1520_s4 = inlined_call_operand.vmem [shape: f32[64,4], index: 4, kind: input, shape index: {}]   ;;  %s1521_s5 = inlined_call_operand.vmem [shape: f32[64,1], index: 5, kind: input, shape index: {}]   ;;  %s1522_s6 = inlined_call_operand.vmem [shape: f32[2,32], index: 6, kind: input, shape index: {}]   ;;  %s1523_s7 = inlined_call_operand.hbm [shape: f32[2,8,32], index: 7, kind: output, shape index: {0}]   ;;  %s1524_s8 = inlined_call_operand.hbm [shape: f32[2,8,256], index: 8, kind: output, shape index: {1}]  }
   0x1   :  { %1525 = sst [smem:[#allocation8_spill]] %s1516_s0 }
   0x2   :  { %14 = vsyncpa [#allocation3], 0 }
   0x3   :  { %16 = vsyncpa [#allocation3 + $0x1], 0 }
   0x4   :  { %17 = vsyncpa [#allocation5], 0 }
   0x5   :  { %19 = vsyncpa [#allocation5 + $0x1], 0  ;;  %s1293_s27 = smov 0   ;;  %s1295_s28 = smov 0  }
   0x6   :  { %s1297_s29 = smov 0   ;;  %s1299_s30 = smov 0  }
   0x7 LB: > { %s1314_s9 = sadd.s32 4294967295, %s1241_s30   ;;  %s1037_s10 = sadd.s32 4294967294, %s1241_s30   ;;  %s1241_s30 = sphi %s1299_s30, %s1532_s30   ;;  %s1237_s29 = sphi %s1297_s29, %s1531_s29   ;;  %s1233_s28 = sphi %s1295_s28, %s1530_s28   ;;  %s1229_s27 = sphi %s1293_s27, %s1529_s27  }
   0x8   : > { %s1318_s11 = sadd.s32 1, %s1241_s30   ;;  %s189_s12 = sadd.s32 1, %s1237_s29 }
   0x9   : > { %s186_s13 = ssub.s32 %s1241_s30, %s1318_s11  ;;  %p199_p0 = scmp.ne.s32.totalorder %s1237_s29, %s1233_s28 }
   0xa   : > { %p187_p1 = scmp.eq.s32.totalorder %s186_s13, 0  ;;  %p200_p2 = scmp.eq.s32.totalorder %s1314_s9, 1 }
   0xb   : > { %p205_p3 = scmp.ne.s32.totalorder %s1233_s28, %s1229_s27  ;;  %p206_p4 = scmp.eq.s32.totalorder %s1037_s10, 1 }
   0xc   : > { %s1329_s14 = scalar_select %p187_p1, %s1237_s29, %s189_s12  }
   0xd   : > { %p1331_p5 = por %p200_p2, %p199_p0  ;;  %p1335_p6 = por %p206_p4, %p205_p3 }
   0xe   : > { %p1040_p7 = scmp.ge.s32.totalorder %s1241_s30, 1  ;;  %p281_p8 = scmp.lt.s32.totalorder %s1241_s30, 3 }
  0x10   : > { %p282_p9 = pnand %p1040_p7, %p281_p8 }
  0x11   : > { %p324_p10 = scmp.lt.s32.totalorder (!%p282_p9), %s1314_s9, 1  ;;  %s1528_s0 = sld [smem:[#allocation8_spill]] (!%p282_p9) }
  0x12   : > { %285 = sbr.rel (%p282_p9) target bundleno = 1456 (0x5b0), region = 48  ;;  %s1044_s22 = sshll.u32 (!%p282_p9), %s1314_s9, 1 }
  0x13   : > { %p329_p11 = scmp.lt.s32.totalorder (!%p282_p9), %s1044_s22, 3  ;;  %s1447_s12 = sand.u32 (!%p282_p9), 1, %s1233_s28  }
  0x14   : > { %s1042_s13 = sshll.u32 (!%p282_p9), %s1447_s12, 4  ;;  %s1066_s20 = sshll.u32 (!%p282_p9), %s1314_s9, 8 }
  0x15   : > { %s932_s24 = scalar_lea.hbm (!%p282_p9), %s1524_s8, %s1066_s20  ;;  %s907_s25 = scalar_lea.sflag (!%p282_p9), [#allocation5], %s1447_s12 }
  0x16   : > { %s1246_s10 = smov (!%p282_p9), [#allocation4]  }
  0x17   : > { %s325_s17 = scalar_select %p324_p10, %s1314_s9, 1  ;;  %vm335_vm0 = vcmask 261120   ;;  %v1243_v2 = vmov 0.0   ;;  %vm438_vm1 = vcmask 1043456   ;;  %v490_v48 = vld [vmem:[%s1520_s4] sm:$0xff]  ;;  %vm548_vm2 = vcmask 31744  }
  0x18   : > { %641 = vmatprep.mubr.f32.mxu1 %v1243_v2  ;;  %1072 = vmatprep.subr.mxu0 %v1243_v2  ;;  %s1534_s22 = smov (!%p329_p11, %s1044_s22), 3  ;;  %v491_v49 = vld [vmem:[%s1520_s4 + $0x8] sm:$0xff]  ;;  %v492_v50 = vld [vmem:[%s1520_s4 + $0x10] sm:$0xff]  ;;  %v493_v51 = vld [vmem:[%s1520_s4 + $0x18] sm:$0xff]  ;;  %vm1244_vm3 = vmmov 0  }
  0x19   : > { %s1043_s18 = sshll.u32 %s325_s17, 3  ;;  %s1045_s23 = sshll.u32 %s1534_s22, 2  ;;  %v494_v57 = vld [vmem:[%s1520_s4 + $0x20] sm:$0xff]  ;;  %v353_v58 = vld [vmem:[%s1518_s2 + $0x18] sm:$0xff]  ;;  %v352_v59 = vld [vmem:[%s1518_s2 + $0x10] sm:$0xff]  ;;  %1080 = vmatprep.mubr.msk.f32.mxu0 %vm1244_vm3, %v1243_v2 }
  0x1a   : > { %s327_s21 = scalar_lea.vmem %s1528_s0, %s1043_s18  ;;  %s332_s26 = scalar_lea.vmem %s1517_s1, %s1045_s23  ;;  %1073 = vmatpush3.msra.mxu0 %v353_v58  ;;  %v495_v60 = vld [vmem:[%s1520_s4 + $0x28] sm:$0xff]  ;;  %v350_v62 = vld [vmem:[%s1518_s2] sm:$0xff]  ;;  %v496_v63 = vld [vmem:[%s1520_s4 + $0x30] sm:$0xff] }
  0x1b   : > { %v1346_v0 = vld [vmem:[%s327_s21] sm:$0xff]  ;;  %1074 = vmatprep.subr.mxu0 %v1243_v2  ;;  %v351_v61 = vld [vmem:[%s1518_s2 + $0x8] sm:$0xff]  ;;  %s1450_s17 = scalar_lea.vmem [#allocation4], %s1042_s13  ;;  %s1155_s13 = sshll.u32 %s1246_s10, 4  ;;  %s1156_s13 = int_to_ptr.vmem [resolvable:$false] %s1155_s13 }
  0x1c   : > { %v336_v1 = vsel %vm335_vm0, %v1346_v0, 0.0  ;;  %v434_v3 = vld [vmem:[%s332_s26] sm:$0xff]  ;;  %1075 = vmatpush3.msra.mxu0 %v352_v59  ;;  %s934_s21 = sshll.u32 %s1450_s17, 4  ;;  %s1157_s18 = scalar_lea.vmem %s1156_s13, 512  ;;  %s935_s21 = int_to_ptr.vmem [resolvable:$true] %s934_s21 }
  0x1d   : > { %337 = vadd.xlane.f32.xlu0 %v336_v1  ;;  %v436_v4 = vcombine.high %v434_v3, %v434_v3  ;;  %v439_v5 = vsel %vm438_vm1, %v434_v3, 0.0  ;;  %1076 = vmatprep.subr.mxu0 %v1243_v2  ;;  %v499_v1 = vld [vmem:[%s1521_s5 + $0x8] sm:$0xff]  ;;  %s1151_s26 = scalar_lea.vmem %s935_s21, 256  ;;  %p1158_p1 = scmp.lt.s32.totalorder %s935_s21, %s1156_s13 }
  0x1e   : > { %v440_v6 = vrot.slane %v439_v5, 4  ;;  %1077 = vmatpush3.msra.mxu0 %v351_v61  ;;  %p1152_p12 = scmp.ne.s32.totalorder %s935_s21, %s1151_s26  ;;  %p1159_p2 = scmp.lt.s32.totalorder %s1157_s18, %s1151_s26 }
  0x1f   : > { %v446_v7 = vsel %vm438_vm1, %v436_v4, 0.0  ;;  %1078 = vmatprep.subr.mxu0 %v1243_v2  ;;  %v500_v4 = vld [vmem:[%s1521_s5 + $0x10] sm:$0xff] }
  0x20   : > { %v441_v8 = vadd.f32 %v440_v6, %v439_v5  ;;  %v447_v9 = vrot.slane %v446_v7, 4  ;;  %1079 = vmatpush3.msra.mxu0 %v350_v62  ;;  %v504_v5 = vld [vmem:[%s1521_s5 + $0x30] sm:$0xff]  ;;  %v498_v6 = vld [vmem:[%s1521_s5] sm:$0xff]  ;;  %p1153_p13 = pnand %p1152_p12, %p1331_p5  ;;  %p1160_p3 = por %p1159_p2, %p1158_p1 }
  0x22   : > { %v442_v10 = vrot.slane %v441_v8, 2  ;;  %v448_v11 = vadd.f32 %v447_v9, %v446_v7  ;;  %v503_v7 = vld [vmem:[%s1521_s5 + $0x28] sm:$0xff]  ;;  %p1154_p0 = pneg %p1153_p13 }
  0x24   : > { %v443_v12 = vadd.f32 %v442_v10, %v441_v8  ;;  %v449_v13 = vrot.slane %v448_v11, 2  ;;  %v502_v8 = vld [vmem:[%s1521_s5 + $0x20] sm:$0xff]  ;;  %p1161_p4 = pnand %p1160_p3, %p1154_p0 }
  0x26   : > { %v444_v14 = vrot.slane %v443_v12, 1  ;;  %v450_v15 = vadd.f32 %v449_v13, %v448_v11 }
  0x28   : > { %v445_v16 = vadd.f32 %v444_v14, %v443_v12  ;;  %v451_v17 = vrot.slane %v450_v15, 1 }
  0x2a   : > { %v452_v18 = vadd.f32 %v451_v17, %v450_v15  ;;  %v454_v19 = vmul.f32 0.25, %v445_v16 }
  0x2c   : > { %v455_v20 = vmul.f32 0.25, %v452_v18 }
  0x2e   : > { %v458_v21 = vcombine.low %v454_v19, %v455_v20 }
  0x30   : > { %v460_v22 = vsub.f32 %v434_v3, %v458_v21  ;;  %v1245_v3 = vmov 0  }
  0x31   : > { %1130 = vset.pattern.permute.xlu1 %v1245_v3  ;;  %1131 = vset.pattern.permute.xlu0 %v1245_v3 }
  0x32   : > { %v461_v23 = vmul.f32 %v460_v22, %v460_v22 }
  0x34   : > { %v463_v24 = vcombine.high %v461_v23, %v461_v23  ;;  %v465_v25 = vsel %vm438_vm1, %v461_v23, 0.0 }
  0x35   : > { %v466_v26 = vrot.slane %v465_v25, 4 }
  0x36   : > { %v472_v27 = vsel %vm438_vm1, %v463_v24, 0.0 }
  0x37   : > { %v467_v28 = vadd.f32 %v466_v26, %v465_v25  ;;  %v473_v29 = vrot.slane %v472_v27, 4 }
  0x39   : > { %v468_v30 = vrot.slane %v467_v28, 2  ;;  %v474_v31 = vadd.f32 %v473_v29, %v472_v27 }
  0x3b   : > { %v469_v32 = vadd.f32 %v468_v30, %v467_v28  ;;  %v475_v33 = vrot.slane %v474_v31, 2 }
  0x3d   : > { %v470_v34 = vrot.slane %v469_v32, 1  ;;  %v476_v35 = vadd.f32 %v475_v33, %v474_v31 }
  0x3f   : > { %v471_v36 = vadd.f32 %v470_v34, %v469_v32  ;;  %v477_v37 = vrot.slane %v476_v35, 1  ;;  %v1046_v34 = vld [vmem:[%s1519_s3] ss:$0 sm:$0xff] }
  0x41   : > { %v478_v38 = vadd.f32 %v477_v37, %v476_v35  ;;  %v479_v39 = vmul.f32 0.25, %v471_v36  ;;  %v497_v37 = vld [vmem:[%s1520_s4 + $0x38] sm:$0xff] }
  0x43   : > { %v480_v40 = vmul.f32 0.25, %v478_v38  ;;  %v481_v41 = vadd.f32 1e-05, %v479_v39 }
  0x45   : > { %v482_v42 = vadd.f32 1e-05, %v480_v40  ;;  %1133 = vrsqrt.f32 %v481_v41 }
  0x47   : > { %1135 = vrsqrt.f32 %v482_v42 }
  0x52   : > { %v1134_v43 = vpop.eup %1133 }
  0x54   : > { %v1136_v44 = vpop.eup %1135 }
  0x55   : > { %v487_v45 = vcombine.low %v1134_v43, %v1136_v44 }
  0x57   : > { %v489_v46 = vmul.f32 %v487_v45, %v460_v22 }
  0x59   : > { %v547_v47 = vcombine.high %v489_v46, %v489_v46 }
  0x5b   : > { %1048 = vmatprep.subr.msk.mxu1 %vm438_vm1, %v547_v47 }
  0x5c   : > { %1049 = vmatpush1.msk.msra.mxu1 %vm438_vm1, %v489_v46 }
  0x5d   : > { %1050 = vmatmul.mubr.msk.f32.vlgmr.msra.gmra.mxu1 %vm548_vm2, %v490_v48 }
  0x5e   : > { %647 = vmatprep.mubr.f32.mxu1 %v1243_v2 }
  0x61   : > { %1051 = vmatmul.mubr.msk.f32.gmra.mxu1 %vm548_vm2, %v491_v49 }
  0x62   : > { %653 = vmatprep.mubr.f32.mxu1 %v1243_v2 }
  0x65   : > { %1052 = vmatmul.mubr.msk.f32.gmra.mxu1 %vm548_vm2, %v492_v50 }
  0x66   : > { %659 = vmatprep.mubr.f32.mxu1 %v1243_v2 }
  0x69   : > { %1053 = vmatmul.mubr.msk.f32.gmra.mxu1 %vm548_vm2, %v493_v51 }
  0x6a   : > { %665 = vmatprep.mubr.f32.mxu1 %v1243_v2 }
  0x6d   : > { %1054 = vmatmul.mubr.msk.f32.gmra.mxu1 %vm548_vm2, %v494_v57 }
  0x6e   : > { %671 = vmatprep.mubr.f32.mxu1 %v1243_v2 }
  0x71   : > { %1055 = vmatmul.mubr.msk.f32.gmra.mxu1 %vm548_vm2, %v495_v60 }
  0x72   : > { %677 = vmatprep.mubr.f32.mxu1 %v1243_v2 }
  0x75   : > { %1056 = vmatmul.mubr.msk.f32.gmra.mxu1 %vm548_vm2, %v496_v63 }
  0x76   : > { %683 = vmatprep.mubr.f32.mxu1 %v1243_v2 }
  0x79   : > { %1057 = vmatmul.mubr.msk.f32.gmra.mxu1 %vm548_vm2, %v497_v37 }
  0xa6   : > { %v338_v52 = vpop.xlane.xlu0 %337 }
  0xa7   : > { %v340_v53 = vmul.f32 0.03125, %v338_v52 }
  0xa9   : > { %v341_v54 = vsub.f32 %v1346_v0, %v340_v53  ;;  %v501_v0 = vld [vmem:[%s1521_s5 + $0x18] sm:$0xff] }
  0xaa   : > { %523 = vperm.xlu1 %1130, %v501_v0  }
  0xab   : > { %v342_v55 = vmul.f32 %v341_v54, %v341_v54 }
  0xad   : > { %v343_v56 = vsel %vm335_vm0, %v342_v55, 0.0 }
  0xae   : > { %344 = vadd.xlane.f32.xlu0 %v343_v56  ;;  %518 = vperm.xlu1 %1130, %v500_v4  }
  0xb2   : > { %508 = vperm.xlu1 %1130, %v498_v6  }
  0xc4   : > { %513 = vperm.xlu0 %1131, %v499_v1  }
  0xc8   : > { %538 = vperm.xlu0 %1131, %v504_v5  }
  0xcc   : > { %533 = vperm.xlu0 %1131, %v503_v7  }
  0xd0   : > { %528 = vperm.xlu0 %1131, %v502_v8  }
 0x11d   : > { %v643_v9 = vpop.f32.mrf.mxu1 }
 0x11f   : > { %v645_v12 = vpop.f32.mrf.mxu1 }
 0x121   : > { %v649_v14 = vpop.f32.mrf.mxu1 }
 0x123   : > { %v651_v15 = vpop.f32.mrf.mxu1 }
 0x125   : > { %v655_v16 = vpop.f32.mrf.mxu1  ;;  %v524_v21 = vpop.permute.xlu1 %523 }
 0x127   : > { %v657_v17 = vpop.f32.mrf.mxu1 }
 0x129   : > { %v661_v18 = vpop.f32.mrf.mxu1  ;;  %v519_v26 = vpop.permute.xlu1 %518 }
 0x12a   : > { %v662_v23 = vadd.f32 %v661_v18, %v524_v21  ;;  %v656_v27 = vadd.f32 %v655_v16, %v519_v26  ;;  %v658_v28 = vadd.f32 %v657_v17, %v519_v26 }
 0x12b   : > { %v663_v19 = vpop.f32.mrf.mxu1 }
 0x12c   : > { %v664_v24 = vadd.f32 %v663_v19, %v524_v21 }
 0x12d   : > { %v509_v31 = vpop.permute.xlu1 %508 }
 0x12e   : > { %718 = vmatprep.subr.mxu0 %v664_v24  ;;  %v644_v32 = vadd.f32 %v643_v9, %v509_v31  ;;  %v646_v33 = vadd.f32 %v645_v12, %v509_v31  ;;  %v505_v12 = vld [vmem:[%s1521_s5 + $0x38] sm:$0xff] }
 0x137   : > { %v345_v10 = vpop.xlane.xlu0 %344 }
 0x138   : > { %v346_v11 = vmul.f32 0.03125, %v345_v10 }
 0x13a   : > { %v347_v13 = vadd.f32 1e-05, %v346_v11 }
 0x13c   : > { %1137 = vrsqrt.f32 %v347_v13  ;;  %v667_v13 = vpop.f32.mrf.mxu1 }
 0x13f   : > { %v514_v25 = vpop.permute.xlu0 %513 }
 0x140   : > { %v652_v29 = vadd.f32 %v651_v15, %v514_v25  ;;  %v650_v30 = vadd.f32 %v649_v14, %v514_v25  ;;  %v669_v14 = vpop.f32.mrf.mxu1 }
 0x142   : > { %v673_v15 = vpop.f32.mrf.mxu1 }
 0x143   : > { %v539_v19 = vpop.permute.xlu0 %538 }
 0x144   : > { %v675_v16 = vpop.f32.mrf.mxu1 }
 0x146   : > { %v679_v17 = vpop.f32.mrf.mxu1 }
 0x147   : > { %v534_v26 = vpop.permute.xlu0 %533 }
 0x148   : > { %v681_v18 = vpop.f32.mrf.mxu1 }
 0x149   : > { %v1138_v20 = vpop.eup %1137 }
 0x14a   : > { %v349_v22 = vmul.f32 %v1138_v20, %v341_v54  ;;  %v685_v20 = vpop.f32.mrf.mxu1 }
 0x14c   : > { %1081 = vmatmul.mubr.msk.f32.vlgmr.msra.gmra.mxu0 %vm335_vm0, %v349_v22  ;;  %v687_v22 = vpop.f32.mrf.mxu1 }
 0x14d   : > { %719 = vmatpush1.msra.mxu0 %v662_v23  ;;  %758 = vmatprep.mubr.f32.mxu0 %v1243_v2 }
 0x14e   : > { %720 = vmatprep.subr.mxu0 %v658_v28  ;;  %v680_v28 = vadd.f32 %v679_v17, %v539_v19 }
 0x14f   : > { %721 = vmatpush1.msra.mxu0 %v656_v27  ;;  %v682_v27 = vadd.f32 %v681_v18, %v539_v19 }
 0x150   : > { %722 = vmatprep.subr.mxu0 %v652_v29  ;;  %v676_v29 = vadd.f32 %v675_v16, %v534_v26 }
 0x151   : > { %723 = vmatpush1.msra.mxu0 %v650_v30  ;;  %v529_v30 = vpop.permute.xlu0 %528 }
 0x152   : > { %724 = vmatprep.subr.mxu0 %v646_v33  ;;  %v670_v33 = vadd.f32 %v669_v14, %v529_v30 }
 0x153   : > { %725 = vmatpush1.msra.mxu0 %v644_v32  ;;  %v674_v32 = vadd.f32 %v673_v15, %v534_v26 }
 0x20c   : > { %v430_v35 = vpop.f32.mrf.mxu0 }
 0x20d   : > { %v431_v36 = vadd.f32 %v1046_v34, %v430_v35  ;;  %v668_v35 = vadd.f32 %v667_v13, %v529_v30 }
 0x20e   : > { %v1082_v2 = vpop.f32.mrf.mxu0 }
 0x20f   : > { %1058 = vmatmul.mubr.msk.f32.vlgmr.msra.gmra.mxu0 %vm335_vm0, %v431_v36 }
 0x2cf   : > { %v760_v38 = vpop.f32.mrf.mxu0 }
 0x2d0   : > { %v765_v39 = vrot.slane %v760_v38, 4 }
 0x2d1   : > { %v762_v40 = vpop.f32.mrf.mxu0 }
 0x2d2   : > { %v766_v41 = vmax.f32 %v760_v38, %v765_v39  ;;  %v771_v42 = vrot.slane %v762_v40, 4 }
 0x2d4   : > { %v767_v43 = vrot.slane %v766_v41, 2  ;;  %v772_v44 = vmax.f32 %v762_v40, %v771_v42 }
 0x2d6   : > { %v768_v45 = vmax.f32 %v766_v41, %v767_v43  ;;  %v773_v46 = vrot.slane %v772_v44, 2 }
 0x2d8   : > { %v769_v47 = vrot.slane %v768_v45, 1  ;;  %v774_v48 = vmax.f32 %v772_v44, %v773_v46 }
 0x2da   : > { %v770_v49 = vmax.f32 %v768_v45, %v769_v47  ;;  %v775_v50 = vrot.slane %v774_v48, 1 }
 0x2dc   : > { %v777_v51 = vsub.f32 %v760_v38, %v770_v49  ;;  %v776_v52 = vmax.f32 %v774_v48, %v775_v50 }
 0x2de   : > { %v779_v53 = vmul.f32 1.442695, %v777_v51  ;;  %v778_v54 = vsub.f32 %v762_v40, %v776_v52 }
 0x2e0   : > { %1139 = vpow2.f32 %v779_v53  ;;  %v781_v55 = vmul.f32 1.442695, %v778_v54 }
 0x2e2   : > { %1141 = vpow2.f32 %v781_v55 }
 0x2ed   : > { %v1140_v56 = vpop.eup %1139 }
 0x2ee   : > { %v783_v57 = vrot.slane %v1140_v56, 4 }
 0x2ef   : > { %v1142_v58 = vpop.eup %1141 }
 0x2f0   : > { %v784_v59 = vadd.f32 %v1140_v56, %v783_v57  ;;  %v789_v60 = vrot.slane %v1142_v58, 4 }
 0x2f2   : > { %v785_v61 = vrot.slane %v784_v59, 2  ;;  %v790_v62 = vadd.f32 %v1142_v58, %v789_v60 }
 0x2f4   : > { %v786_v63 = vadd.f32 %v785_v61, %v784_v59  ;;  %v791_v0 = vrot.slane %v790_v62, 2 }
 0x2f6   : > { %v787_v1 = vrot.slane %v786_v63, 1  ;;  %v792_v3 = vadd.f32 %v791_v0, %v790_v62 }
 0x2f8   : > { %v788_v4 = vadd.f32 %v787_v1, %v786_v63  ;;  %v793_v5 = vrot.slane %v792_v3, 1 }
 0x2fa   : > { %v794_v6 = vadd.f32 %v793_v5, %v792_v3  ;;  %1143 = vrcp.f32 %v788_v4 }
 0x2fc   : > { %1145 = vrcp.f32 %v794_v6 }
 0x307   : > { %v1144_v7 = vpop.eup %1143 }
 0x308   : > { %v797_v8 = vmul.f32 %v1144_v7, %v1140_v56 }
 0x309   : > { %v1146_v9 = vpop.eup %1145 }
 0x30a   : > { %v798_v10 = vmul.f32 %v1146_v9, %v1142_v58  ;;  %799 = vst [vmem:[%s1450_s17] sm:$0xff] %v797_v8 }
 0x30c   : > { %v801_v11 = vadd.f32 %v798_v10, %v797_v8  ;;  %800 = vst [vmem:[%s1450_s17 + $0x8] sm:$0xff] %v798_v10 }
 0x30e   : > { %802 = vadd.xlane.f32.xlu1 %v801_v11 }
 0x31f   : > { %543 = vperm.xlu1 %1130, %v505_v12  }
 0x397   : > { %v803_v21 = vpop.xlane.xlu1 %802 }
 0x398   : > { %1147 = vrcp.f32 %v803_v21 }
 0x39b   : > { %v544_v23 = vpop.permute.xlu1 %543 }
 0x39c   : > { %v686_v24 = vadd.f32 %v685_v20, %v544_v23  ;;  %v688_v25 = vadd.f32 %v687_v22, %v544_v23 }
 0x39e   : > { %831 = vmatprep.subr.mxu0 %v688_v25 }
 0x39f   : > { %832 = vmatpush1.xpose.msra.mxu0 %v686_v24 }
 0x3a0   : > { %833 = vmatprep.subr.mxu0 %v682_v27 }
 0x3a3   : > { %834 = vmatpush1.xpose.msra.mxu0 %v680_v28 }
 0x3a4   : > { %835 = vmatprep.subr.mxu0 %v676_v29 }
 0x3a5   : > { %v1148_v31 = vpop.eup %1147 }
 0x3a6   : > { %v806_v34 = vmul.f32 %v1148_v31, %v798_v10  ;;  %v805_v36 = vmul.f32 %v1148_v31, %v797_v8 }
 0x3a7   : > { %836 = vmatpush1.xpose.msra.mxu0 %v674_v32 }
 0x3a8   : > { %837 = vmatprep.subr.mxu0 %v670_v33  ;;  %871 = vmatprep.mubr.f32.mxu0 %v806_v34 }
 0x3ab   : > { %838 = vmatpush1.xpose.msra.mxu0 %v668_v35 }
 0x3ae   : > { %872 = vmatmul.mubr.f32.vlgmr.msra.gmra.mxu0 %v805_v36 }
 0x46e   : > { %v873_v2 = vpop.f32.mrf.mxu0 }
 0x46f   : > { %v877_v37 = vsel %vm335_vm0, %v873_v2, 0.0 }
 0x470   : > { %878 = vadd.xlane.f32.xlu0 %v877_v37  ;;  %v875_v38 = vpop.f32.mrf.mxu0 }
 0x4f9   : > { %v879_v39 = vpop.xlane.xlu0 %878 }
 0x4fa   : > { %v880_v40 = vmul.f32 0.03125, %v879_v39 }
 0x4fc   : > { %v881_v41 = vsub.f32 %v873_v2, %v880_v40 }
 0x4fe   : > { %v882_v42 = vmul.f32 %v881_v41, %v881_v41 }
 0x500   : > { %v883_v43 = vsel %vm335_vm0, %v882_v42, 0.0 }
 0x501   : > { %884 = vadd.xlane.f32.xlu1 %v883_v43 }
 0x502   : > { %1164 = shalt.err (!%p1161_p4)
}
 0x503   : > { %s1165_s17 = scalar_lea.hbm %s932_s24, 256  ;;  %s1169_s22 = scalar_lea.hbm %s1524_s8, 512 }
 0x504   : > { %p1166_p7 = scmp.ne.s32.totalorder %s932_s24, %s1165_s17  ;;  %p1170_p10 = scmp.lt.s32.totalorder %s932_s24, %s1524_s8 }
 0x505   : > { %p1171_p11 = scmp.lt.s32.totalorder %s1169_s22, %s1165_s17 }
 0x506   : > { %p1167_p8 = pnand %p1166_p7, %p1331_p5 }
 0x507   : > { %p1172_p12 = por %p1171_p11, %p1170_p10 }
 0x508   : > { %p1168_p9 = pneg %p1167_p8 }
 0x50a   : > { %p1173_p13 = pnand %p1172_p12, %p1168_p9 }
 0x50c   : > { %1176 = shalt.err (!%p1173_p13)
}
 0x50d   : > { %1084 = dma.vmem_to_hbm [thread:$0]  (%p1331_p5), %s935_s21, 256, %s932_s24, %s907_s25   ;;  %v890_v47 = vlaneseq  ;;  %v690_v50 = vld [vmem:[%s1522_s6] sm:$0x3] }
 0x50e   : > { %s1041_s26 = sshll.u32 %s1447_s12, 3  ;;  %s1061_s21 = sshll.u32 %s1314_s9, 7 }
 0x50f   : > { %v891_v48 = vshrl.u32 %v890_v47, 7  ;;  %s316_s24 = scalar_lea.vmem [#allocation2], %s1041_s26  ;;  %s918_s17 = scalar_lea.hbm %s1523_s7, %s1061_s21 }
 0x510   : > { %s920_s25 = sshll.u32 %s316_s24, 4  ;;  %s902_s19 = scalar_lea.sflag [#allocation3], %s1447_s12  ;;  %s921_s25 = int_to_ptr.vmem [resolvable:$true] %s920_s25 }
 0x511   : > { %v892_v49 = vsub.s32 0, %v891_v48  ;;  %v897_v51 = vsub.s32 1, %v891_v48  ;;  %s1177_s20 = scalar_lea.vmem %s921_s25, 128  ;;  %s1247_s22 = smov [#allocation2]  }
 0x512   : > { %p1178_p0 = scmp.ne.s32.totalorder %s921_s25, %s1177_s20  ;;  %s1181_s23 = sshll.u32 %s1247_s22, 4  ;;  %s1182_s23 = int_to_ptr.vmem [resolvable:$false] %s1181_s23 }
 0x513   : > { %v893_v52 = vrot.slane %v690_v50, %v892_v49  ;;  %v898_v55 = vrot.slane %v690_v50, %v897_v51  ;;  %s1183_s9 = scalar_lea.vmem %s1182_s23, 256  ;;  %p1184_p3 = scmp.lt.s32.totalorder %s921_s25, %s1182_s23 }
 0x514   : > { %p1179_p1 = pnand %p1178_p0, %p1331_p5  ;;  %p1185_p4 = scmp.lt.s32.totalorder %s1183_s9, %s1177_s20 }
 0x516   : > { %p1180_p2 = pneg %p1179_p1  ;;  %p1186_p7 = por %p1185_p4, %p1184_p3 }
 0x518   : > { %p1187_p8 = pnand %p1186_p7, %p1180_p2 }
 0x58a   : > { %v885_v44 = vpop.xlane.xlu1 %884 }
 0x58b   : > { %v886_v45 = vmul.f32 0.03125, %v885_v44 }
 0x58d   : > { %v887_v46 = vadd.f32 1e-05, %v886_v45 }
 0x58f   : > { %1149 = vrsqrt.f32 %v887_v46 }
 0x59c   : > { %v1150_v53 = vpop.eup %1149 }
 0x59d   : > { %v889_v54 = vmul.f32 %v1150_v53, %v881_v41 }
 0x59f   : > { %v894_v56 = vmul.f32 %v893_v52, %v889_v54 }
 0x5a1   : > { %v899_v57 = vadd.f32 %v898_v55, %v894_v56 }
 0x5a3   : > { %900 = vst.msk [vmem:[%s316_s24] sm:$0xff] %vm335_vm0, %v899_v57 }
 0x5a4   : > { %1190 = shalt.err (!%p1187_p8)
}
 0x5a5   : > { %s1191_s26 = scalar_lea.hbm %s918_s17, 128  ;;  %s1195_s10 = scalar_lea.hbm %s1523_s7, 256 }
 0x5a6   : > { %p1192_p9 = scmp.ne.s32.totalorder %s918_s17, %s1191_s26  ;;  %p1196_p12 = scmp.lt.s32.totalorder %s918_s17, %s1523_s7 }
 0x5a7   : > { %p1197_p13 = scmp.lt.s32.totalorder %s1195_s10, %s1191_s26 }
 0x5a8   : > { %p1193_p10 = pnand %p1192_p9, %p1331_p5 }
 0x5a9   : > { %p1198_p0 = por %p1197_p13, %p1196_p12 }
 0x5aa   : > { %p1194_p11 = pneg %p1193_p10 }
 0x5ac   : > { %p1199_p1 = pnand %p1198_p0, %p1194_p11 }
 0x5ae   : > { %1202 = shalt.err (!%p1199_p1)
}
 0x5af   : > { %1083 = dma.vmem_to_hbm [thread:$0]  (%p1331_p5), %s921_s25, 128, %s918_s17, %s902_s19  }
 0x5b0 PF: > { %p1094_p2 = scmp.ge.s32.totalorder %s1241_s30, 2  ;;  %s946_s13 = sand.u32 1, %s1229_s27  }
 0x5b1   : > { %s947_s18 = scalar_lea.sflag [#allocation3], %s946_s13 }
 0x5b2   : > { %p1088_p3 = pnand %p1094_p2, %p1335_p6 }
 0x5b4   : > { %p1089_p4 = pneg %p1088_p3 }
 0x5b6   : > { %1220 = dma.done.wait (%p1089_p4), %s947_s18, 128  }
 0x5b7   : > { %1222 = vsyncadd (%p1089_p4), %s947_s18, 4294967168  ;;  %s956_s20 = scalar_lea.sflag [#allocation5], %s946_s13 }
 0x5b8   : > { %1224 = dma.done.wait (%p1089_p4), %s956_s20, 256  }
 0x5b9   : > { %1226 = vsyncadd (%p1089_p4), %s956_s20, 4294967040  ;;  %p22_p5 = scmp.ge.s32.totalorder %s1318_s11, 4   ;;  %s1529_s27 = smov %s1233_s28 }
 0x5ba   : > { %s1530_s28 = smov %s1237_s29  ;;  %s1531_s29 = smov %s1329_s14 }
 0x5bb   : > { %s1532_s30 = smov %s1318_s11  ;;  %24 = sbr.rel (!%p22_p5) target bundleno = 7 (0x7), region = 103 }
 0x5c0   :  { %961 = vsyncpa [#allocation3], 1 }
 0x5c1   :  { %963 = vsyncpa [#allocation3 + $0x1], 1 }
 0x5c2   :  { %964 = vsyncpa [#allocation5], 1 }
 0x5c3   :  { %966 = vsyncpa [#allocation5 + $0x1], 1 }

</bundles_post_ra>
